<compile_context>
chip_gen: v7x
topology: tpu7x:2x2x1
jax: 0.10.0
libtpu: 0.0.40
codegen_flags: <defaults>
</compile_context>

<pallas_src>
import jax
import jax.numpy as jnp
from jax.experimental import pallas as pl
from jax.experimental.pallas import tpu as pltpu

KH = KW = 4
STRIDE = 2
BN_EPS = 1e-5
LANES = 128
NUM_GROUPS = (KH // STRIDE) * (KW // STRIDE)   # 4 stride-parity tap groups (q, s)


def _round_up(v, m):
    return ((v + m - 1) // m) * m


def _pick_batch_block(n, m_per_img, max_rows=512):
    """Largest divisor of n whose GEMM M (= b * m_per_img) stays within max_rows."""
    b = 1
    for cand in range(1, n + 1):
        if n % cand == 0 and cand * m_per_img <= max_rows:
            b = cand
    return b


def _vmem_limit_bytes():
    """Generation-dependent VMEM budget: 96 MiB on v5e/v6e (128 MiB physical),
    48 MiB on v7x (64 MiB physical), 32 MiB safe fallback."""
    lim = 32 * 1024 * 1024
    try:
        cap = getattr(pltpu.get_tpu_info(), "vmem_capacity_bytes", 0) or 0
        if cap >= 96 * 1024 * 1024:
            lim = 96 * 1024 * 1024
        elif cap >= 48 * 1024 * 1024:
            lim = 48 * 1024 * 1024
    except Exception:
        pass
    return lim


def resblock_kernel(lhs_ref, w_ref, shift_ref, res_ref, o_ref):
    """One grid step = one batch block.

    lhs_ref  : [1, G, Mpad, Kp]  bf16  per tap-group GEMM LHS (M = batch_block*OH*OW rows)
    w_ref    : [G, Kp, DAMP]     bf16  BN-folded conv weights (resident)
    shift_ref: [1, DAMP]         f32   BN-folded bias/shift   (resident)
    res_ref  : [1, Mpad, DAMP]   f32   residual rows
    o_ref    : [1, Mpad, DAMP]   f32
    """
    # Single live f32 accumulator across the (static, unrolled) group reduction.
    acc = jnp.dot(lhs_ref[0, 0], w_ref[0], preferred_element_type=jnp.float32)
    for g in range(1, NUM_GROUPS):
        acc = acc + jnp.dot(lhs_ref[0, g], w_ref[g],
                            preferred_element_type=jnp.float32)
    y = jnp.maximum(acc + shift_ref[...], 0.0)       # +shift -> ReLU (f32 epilogue)
    o_ref[...] = res_ref[...] + y                    # one dense full-block store


def resblock_forward(x, conv_w, conv_b, gamma, beta, running_mean, running_var):
    """x: [N, C, H, W] (NCHW, like PyTorch).  Returns [N, dam, H, W] (eval-mode BN)."""
    N, C, H, W = x.shape
    dam = conv_w.shape[0]
    x = x.astype(jnp.float32)

    OH = (H + 4 - KH) // STRIDE + 1
    OW = (W + 4 - KW) // STRIDE + 1
    # residual add in the PyTorch module only type-checks under this constraint:
    assert OH == H and OW == W and dam == C, "ResBlock residual requires H=W=2, dam=dim"

    M_IMG = OH * OW                         # GEMM rows contributed by one image (= 4)
    KF = STRIDE * STRIDE * C                # folded contraction (row parity, col parity, C)
    Kp = _round_up(KF, LANES)
    DAMP = _round_up(dam, LANES)

    B = _pick_batch_block(N, M_IMG)         # batch sub-tile per grid step
    NBLK = N // B
    M = B * M_IMG
    Mpad = _round_up(M, 8)                  # sublane-dense rows

    # ---- activation layout (wrapper side; per tap-GROUP windows, not per-tap im2col) ----
    xr = jnp.pad(x, ((0, 0), (0, 0), (1, 1), (1, 1)), mode="reflect")   # reflect pad, f32
    xb = xr.astype(jnp.bfloat16)            # cast early: later layout passes move half the bytes
    xn = jnp.transpose(xb, (0, 2, 3, 1))                                 # NHWC
    xp = jnp.pad(xn, ((0, 0), (1, 1), (1, 1), (0, 0)))                   # conv zero pad
    Hp2, Wp2 = (H + 4) // STRIDE, (W + 4) // STRIDE
    # fold stride-2 parities into channels: x2[n,i,j,p,r,c] = xp[n, 2i+p, 2j+r, c]
    x2 = xp.reshape(N, Hp2, STRIDE, Wp2, STRIDE, C)
    x2 = jnp.transpose(x2, (0, 1, 3, 2, 4, 5))                           # [N,Hp2,Wp2,2,2,C]
    # per tap-group (q,s) window -> contiguous [M_IMG, 4*C] GEMM LHS slab
    wins = jnp.stack([x2[:, q:q + OH, s:s + OW]
                      for q in range(KH // STRIDE)
                      for s in range(KW // STRIDE)], axis=1)             # [N,4,OH,OW,2,2,C]
    lhs = wins.reshape(N, NUM_GROUPS, M_IMG, KF)
    lhs = jnp.pad(lhs, ((0, 0), (0, 0), (0, 0), (0, Kp - KF)))           # lane-align K
    lhs = lhs.reshape(NBLK, B, NUM_GROUPS, M_IMG, Kp)
    lhs = jnp.transpose(lhs, (0, 2, 1, 3, 4)).reshape(NBLK, NUM_GROUPS, M, Kp)
    lhs = jnp.pad(lhs, ((0, 0), (0, 0), (0, Mpad - M), (0, 0)))          # sublane-align M

    # ---- fold conv bias + eval-mode BN into weights / shift ----
    inv_std = jax.lax.rsqrt(running_var.astype(jnp.float32) + BN_EPS)
    scale = gamma.astype(jnp.float32) * inv_std                          # [dam]
    w_f = conv_w.astype(jnp.float32) * scale[:, None, None, None]        # [dam,C,KH,KW]
    w_f = jnp.transpose(w_f, (2, 3, 1, 0))                               # [KH,KW,C,dam]
    w_f = w_f.reshape(KH // STRIDE, STRIDE, KW // STRIDE, STRIDE, C, dam)  # [q,p,s,r,C,dam]
    w_f = jnp.transpose(w_f, (0, 2, 1, 3, 4, 5)).reshape(NUM_GROUPS, KF, dam)
    w_f = jnp.pad(w_f, ((0, 0), (0, Kp - KF), (0, DAMP - dam))).astype(jnp.bfloat16)
    shift = beta.astype(jnp.float32) + (
        conv_b.astype(jnp.float32) - running_mean.astype(jnp.float32)) * scale
    shift = jnp.pad(shift, (0, DAMP - dam)).reshape(1, DAMP)

    # ---- residual in the kernel's [NBLK, Mpad, DAMP] row layout (rows = b*OH*OW + oh*OW + ow) ----
    res = jnp.transpose(x, (0, 2, 3, 1))                                 # [N,OH,OW,C] f32
    res = jnp.pad(res, ((0, 0), (0, 0), (0, 0), (0, DAMP - dam)))
    res = res.reshape(NBLK, M, DAMP)
    res = jnp.pad(res, ((0, 0), (0, Mpad - M), (0, 0)))

    out = pl.pallas_call(
        resblock_kernel,
        out_shape=jax.ShapeDtypeStruct((NBLK, Mpad, DAMP), jnp.float32),
        grid=(NBLK,),
        in_specs=[
            pl.BlockSpec((1, NUM_GROUPS, Mpad, Kp), lambda n: (n, 0, 0, 0)),
            pl.BlockSpec((NUM_GROUPS, Kp, DAMP), lambda n: (0, 0, 0)),   # resident weights
            pl.BlockSpec((1, DAMP), lambda n: (0, 0)),                   # resident shift
            pl.BlockSpec((1, Mpad, DAMP), lambda n: (n, 0, 0)),
        ],
        out_specs=pl.BlockSpec((1, Mpad, DAMP), lambda n: (n, 0, 0)),
        compiler_params=pltpu.CompilerParams(
            dimension_semantics=("parallel",),
            vmem_limit_bytes=_vmem_limit_bytes(),
        ),
    )(lhs, w_f, shift, res)

    out = out[:, :M, :dam].reshape(N, OH, OW, dam)                       # drop padding
    return jnp.transpose(out, (0, 3, 1, 2))                              # back to NCHW


def reference_forward(x, conv_w, conv_b, gamma, beta, running_mean, running_var):
    """Pure-JAX reference mirroring the PyTorch forward (eval-mode BN)."""
    xp = jnp.pad(x, ((0, 0), (0, 0), (1, 1), (1, 1)), mode="reflect")
    y = jax.lax.conv_general_dilated(
        xp, conv_w, window_strides=(STRIDE, STRIDE), padding=((1, 1), (1, 1)),
        dimension_numbers=("NCHW", "OIHW", "NCHW"))
    y = y + conv_b[None, :, None, None]
    y = ((y - running_mean[None, :, None, None])
         / jnp.sqrt(running_var[None, :, None, None] + BN_EPS)
         * gamma[None, :, None, None] + beta[None, :, None, None])
    y = jnp.maximum(y, 0.0)
    return x + y


if __name__ == "__main__":
    # shapes implied by the forward: dim == dam, H == W == 2
    N, dim, dam, H, W = 2, 4, 4, 2, 2

    key = jax.random.PRNGKey(0)
    kx, kw_, kb, kg, kbe, krm, krv = jax.random.split(key, 7)

    x = jax.random.normal(kx, (N, dim, H, W), dtype=jnp.float32)
    conv_w = jax.random.normal(kw_, (dam, dim, KH, KW), dtype=jnp.float32) * 0.1
    conv_b = jax.random.normal(kb, (dam,), dtype=jnp.float32) * 0.1
    gamma = 1.0 + 0.1 * jax.random.normal(kg, (dam,), dtype=jnp.float32)
    beta = 0.1 * jax.random.normal(kbe, (dam,), dtype=jnp.float32)
    running_mean = 0.1 * jax.random.normal(krm, (dam,), dtype=jnp.float32)
    running_var = 1.0 + 0.1 * jax.random.uniform(krv, (dam,), dtype=jnp.float32)

    out = resblock_forward(x, conv_w, conv_b, gamma, beta, running_mean, running_var)
    out = jax.block_until_ready(out)

    ref = reference_forward(x, conv_w, conv_b, gamma, beta, running_mean, running_var)
    assert out.shape == ref.shape == (N, dam, H, W)
    # bf16 MXU inputs (f32 accumulation) => loosened tolerance vs the f32 reference
    err = float(jnp.max(jnp.abs(out - ref)))
    assert err < 5e-2, f"mismatch vs reference: {err}"

    print("KERNEL_OK")
</pallas_src>

<mosaic_0001>
module attributes {stable_mosaic.version = 11 : i64} {
  func.func @resblock_kernel(%arg0: i32, %arg1: memref<1x4x8x128xbf16, #tpu.memory_space<vmem>>, %arg2: memref<4x128x128xbf16, #tpu.memory_space<vmem>>, %arg3: memref<1x128xf32, #tpu.memory_space<vmem>>, %arg4: memref<1x8x128xf32, #tpu.memory_space<vmem>>, %arg5: memref<1x8x128xf32, #tpu.memory_space<vmem>>) attributes {dimension_semantics = [#tpu.dimension_semantics<parallel>], iteration_bounds = array<i64: 1>, scalar_prefetch = 0 : i64, scratch_operands = 0 : i64, tpu.core_type = #tpu.core_type<tc>, window_params = [{transform_indices = @transform_0, window_bounds = array<i64: 1, 4, 8, 128>}, {pipeline_mode = #tpu.pipeline_mode<synchronous>, transform_indices = @transform_1, window_bounds = array<i64: 4, 128, 128>}, {pipeline_mode = #tpu.pipeline_mode<synchronous>, transform_indices = @transform_2, window_bounds = array<i64: 1, 128>}, {transform_indices = @transform_3, window_bounds = array<i64: 1, 8, 128>}, {transform_indices = @transform_4, window_bounds = array<i64: 1, 8, 128>}]} {
    %c0 = arith.constant 0 : index
    %c0_0 = arith.constant 0 : index
    %c0_1 = arith.constant 0 : index
    %c0_2 = arith.constant 0 : index
    %0 = vector.load %arg1[%c0, %c0_0, %c0_1, %c0_2] : memref<1x4x8x128xbf16, #tpu.memory_space<vmem>>, vector<1x1x8x128xbf16>
    %1 = vector.shape_cast %0 : vector<1x1x8x128xbf16> to vector<8x128xbf16>
    %c0_3 = arith.constant 0 : index
    %c0_4 = arith.constant 0 : index
    %c0_5 = arith.constant 0 : index
    %2 = vector.load %arg2[%c0_3, %c0_4, %c0_5] : memref<4x128x128xbf16, #tpu.memory_space<vmem>>, vector<1x128x128xbf16>
    %3 = vector.shape_cast %2 : vector<1x128x128xbf16> to vector<128x128xbf16>
    %cst = arith.constant dense<0.000000e+00> : vector<8x128xf32>
    %4 = tpu.matmul %1, %3, %cst {dimension_numbers = #tpu.dot_dimension_numbers<[1], [0], [0], [1], [0, 0, 1, 1], [], []>} : vector<8x128xbf16>, vector<128x128xbf16>, vector<8x128xf32> -> vector<8x128xf32>
    %c0_6 = arith.constant 0 : index
    %c1 = arith.constant 1 : index
    %c0_7 = arith.constant 0 : index
    %c0_8 = arith.constant 0 : index
    %5 = vector.load %arg1[%c0_6, %c1, %c0_7, %c0_8] : memref<1x4x8x128xbf16, #tpu.memory_space<vmem>>, vector<1x1x8x128xbf16>
    %6 = vector.shape_cast %5 : vector<1x1x8x128xbf16> to vector<8x128xbf16>
    %c1_9 = arith.constant 1 : index
    %c0_10 = arith.constant 0 : index
    %c0_11 = arith.constant 0 : index
    %7 = vector.load %arg2[%c1_9, %c0_10, %c0_11] : memref<4x128x128xbf16, #tpu.memory_space<vmem>>, vector<1x128x128xbf16>
    %8 = vector.shape_cast %7 : vector<1x128x128xbf16> to vector<128x128xbf16>
    %cst_12 = arith.constant dense<0.000000e+00> : vector<8x128xf32>
    %9 = tpu.matmul %6, %8, %cst_12 {dimension_numbers = #tpu.dot_dimension_numbers<[1], [0], [0], [1], [0, 0, 1, 1], [], []>} : vector<8x128xbf16>, vector<128x128xbf16>, vector<8x128xf32> -> vector<8x128xf32>
    %10 = arith.addf %4, %9 : vector<8x128xf32>
    %c0_13 = arith.constant 0 : index
    %c2 = arith.constant 2 : index
    %c0_14 = arith.constant 0 : index
    %c0_15 = arith.constant 0 : index
    %11 = vector.load %arg1[%c0_13, %c2, %c0_14, %c0_15] : memref<1x4x8x128xbf16, #tpu.memory_space<vmem>>, vector<1x1x8x128xbf16>
    %12 = vector.shape_cast %11 : vector<1x1x8x128xbf16> to vector<8x128xbf16>
    %c2_16 = arith.constant 2 : index
    %c0_17 = arith.constant 0 : index
    %c0_18 = arith.constant 0 : index
    %13 = vector.load %arg2[%c2_16, %c0_17, %c0_18] : memref<4x128x128xbf16, #tpu.memory_space<vmem>>, vector<1x128x128xbf16>
    %14 = vector.shape_cast %13 : vector<1x128x128xbf16> to vector<128x128xbf16>
    %cst_19 = arith.constant dense<0.000000e+00> : vector<8x128xf32>
    %15 = tpu.matmul %12, %14, %cst_19 {dimension_numbers = #tpu.dot_dimension_numbers<[1], [0], [0], [1], [0, 0, 1, 1], [], []>} : vector<8x128xbf16>, vector<128x128xbf16>, vector<8x128xf32> -> vector<8x128xf32>
    %16 = arith.addf %10, %15 : vector<8x128xf32>
    %c0_20 = arith.constant 0 : index
    %c3 = arith.constant 3 : index
    %c0_21 = arith.constant 0 : index
    %c0_22 = arith.constant 0 : index
    %17 = vector.load %arg1[%c0_20, %c3, %c0_21, %c0_22] : memref<1x4x8x128xbf16, #tpu.memory_space<vmem>>, vector<1x1x8x128xbf16>
    %18 = vector.shape_cast %17 : vector<1x1x8x128xbf16> to vector<8x128xbf16>
    %c3_23 = arith.constant 3 : index
    %c0_24 = arith.constant 0 : index
    %c0_25 = arith.constant 0 : index
    %19 = vector.load %arg2[%c3_23, %c0_24, %c0_25] : memref<4x128x128xbf16, #tpu.memory_space<vmem>>, vector<1x128x128xbf16>
    %20 = vector.shape_cast %19 : vector<1x128x128xbf16> to vector<128x128xbf16>
    %cst_26 = arith.constant dense<0.000000e+00> : vector<8x128xf32>
    %21 = tpu.matmul %18, %20, %cst_26 {dimension_numbers = #tpu.dot_dimension_numbers<[1], [0], [0], [1], [0, 0, 1, 1], [], []>} : vector<8x128xbf16>, vector<128x128xbf16>, vector<8x128xf32> -> vector<8x128xf32>
    %22 = arith.addf %16, %21 : vector<8x128xf32>
    %c0_27 = arith.constant 0 : index
    %c0_28 = arith.constant 0 : index
    %23 = vector.load %arg3[%c0_27, %c0_28] : memref<1x128xf32, #tpu.memory_space<vmem>>, vector<1x128xf32>
    %24 = vector.broadcast %23 : vector<1x128xf32> to vector<8x128xf32>
    %25 = arith.addf %22, %24 : vector<8x128xf32>
    %cst_29 = arith.constant 0.000000e+00 : f32
    %26 = vector.broadcast %cst_29 : f32 to vector<8x128xf32>
    %27 = arith.maximumf %25, %26 : vector<8x128xf32>
    %c0_30 = arith.constant 0 : index
    %c0_31 = arith.constant 0 : index
    %c0_32 = arith.constant 0 : index
    %28 = vector.load %arg4[%c0_30, %c0_31, %c0_32] : memref<1x8x128xf32, #tpu.memory_space<vmem>>, vector<1x8x128xf32>
    %29 = vector.shape_cast %27 : vector<8x128xf32> to vector<1x8x128xf32>
    %30 = arith.addf %28, %29 : vector<1x8x128xf32>
    %c0_33 = arith.constant 0 : index
    %c0_34 = arith.constant 0 : index
    %c0_35 = arith.constant 0 : index
    %31 = vector.load %arg5[%c0_33, %c0_34, %c0_35] : memref<1x8x128xf32, #tpu.memory_space<vmem>>, vector<1x8x128xf32>
    tpu.vector_store %arg5[%c0_33, %c0_34, %c0_35], %30 {strides = array<i32>} : memref<1x8x128xf32, #tpu.memory_space<vmem>>, vector<1x8x128xf32>,
    return
  }
  func.func @transform_0(%arg0: i32) -> (i32, i32, i32, i32) {
    %c0_i32 = arith.constant 0 : i32
    %c0_i32_0 = arith.constant 0 : i32
    %c0_i32_1 = arith.constant 0 : i32
    %c0_i32_2 = arith.constant 0 : i32
    return %arg0, %c0_i32, %c0_i32_0, %c0_i32_1 : i32, i32, i32, i32
  }
  func.func @transform_1(%arg0: i32) -> (i32, i32, i32) {
    %c0_i32 = arith.constant 0 : i32
    %c0_i32_0 = arith.constant 0 : i32
    %c0_i32_1 = arith.constant 0 : i32
    %c0_i32_2 = arith.constant 0 : i32
    return %c0_i32, %c0_i32_0, %c0_i32_1 : i32, i32, i32
  }
  func.func @transform_2(%arg0: i32) -> (i32, i32) {
    %c0_i32 = arith.constant 0 : i32
    %c0_i32_0 = arith.constant 0 : i32
    %c0_i32_1 = arith.constant 0 : i32
    return %c0_i32, %c0_i32_0 : i32, i32
  }
  func.func @transform_3(%arg0: i32) -> (i32, i32, i32) {
    %c0_i32 = arith.constant 0 : i32
    %c0_i32_0 = arith.constant 0 : i32
    %c0_i32_1 = arith.constant 0 : i32
    return %arg0, %c0_i32, %c0_i32_0 : i32, i32, i32
  }
  func.func @transform_4(%arg0: i32) -> (i32, i32, i32) {
    %c0_i32 = arith.constant 0 : i32
    %c0_i32_0 = arith.constant 0 : i32
    %c0_i32_1 = arith.constant 0 : i32
    return %arg0, %c0_i32, %c0_i32_0 : i32, i32, i32
  }
}

</mosaic_0001>

<bundles_post_ra>
// kernel: tpu_custom_call.1
= control target key start
LH: loop header
LB: loop body
LE: loop exit
PB: predicated region body
PF: predicated region fallthrough
CT: control target
= control target key end

     0   :  { %9 = vsyncpa [#allocation3], 0  ;;  %s877_s0 = inlined_call_operand.hbm [shape: bf16[1,4,8,128], index: 0, kind: input, shape index: {}]   ;;  %s878_s1 = inlined_call_operand.hbm [shape: bf16[4,128,128], index: 1, kind: input, shape index: {}]   ;;  %s879_s2 = inlined_call_operand.vmem [shape: f32[1,128], index: 2, kind: input, shape index: {}]   ;;  %s880_s3 = inlined_call_operand.vmem [shape: f32[1,8,128], index: 3, kind: input, shape index: {}]   ;;  %s881_s4 = inlined_call_operand.hbm [shape: f32[1,8,128], index: 4, kind: output, shape index: {}]  }
   0x1   :  { %10 = vsyncpa [#allocation6], 0 }
   0x2   :  { %11 = vsyncpa [#allocation4], 0  ;;  %s763_s15 = smov [#allocation2]   ;;  %s691_s19 = scalar_lea.hbm %s877_s0, 256 }
   0x3   :  { %s17_s16 = sshll.u32 %s763_s15, 4  ;;  %p692_p0 = scmp.ne.s32.totalorder %s877_s0, %s691_s19  ;;  %s18_s16 = int_to_ptr.vmem [resolvable:$true] %s17_s16 }
   0x4   :  { %p695_p1 = scmp.lt.u32.totalorder %s691_s19, %s877_s0 }
   0x6   :  { %p697_p2 = pnand %p695_p1, %p692_p0 }
   0x8   :  { %700 = shalt.err (!%p697_p2)
}
   0x9   :  { %s701_s24 = scalar_lea.vmem %s18_s16, 256  ;;  %p706_p4 = scmp.lt.s32.totalorder %s18_s16, %s18_s16 }
   0xa   :  { %p702_p3 = scmp.ne.s32.totalorder %s18_s16, %s701_s24  ;;  %p707_p5 = scmp.lt.s32.totalorder %s701_s24, %s701_s24 }
   0xc   :  { %p708_p6 = por %p707_p5, %p706_p4 }
   0xe   :  { %p709_p7 = pnand %p708_p6, %p702_p3 }
  0x10   :  { %712 = shalt.err (!%p709_p7)
}
  0x11   :  { %s764_s25 = smov 64   ;;  %s765_s26 = smov 4  }
  0x12   :  { %23 = dma.hbm_to_vmem [thread:$0]  %s877_s0, 256, %s18_s16, [#allocation3], %s764_s25, %s764_s25, %s765_s26  }
  0x13   :  { %s766_s29 = smov [#allocation5]   ;;  %s713_s7 = scalar_lea.hbm %s878_s1, 4096 }
  0x14   :  { %s29_s30 = sshll.u32 %s766_s29, 4  ;;  %p714_p8 = scmp.ne.s32.totalorder %s878_s1, %s713_s7  ;;  %s30_s30 = int_to_ptr.vmem [resolvable:$true] %s29_s30 }
  0x15   :  { %p717_p9 = scmp.lt.u32.totalorder %s713_s7, %s878_s1 }
  0x17   :  { %p719_p10 = pnand %p717_p9, %p714_p8 }
  0x19   :  { %722 = shalt.err (!%p719_p10)
}
  0x1a   :  { %s723_s12 = scalar_lea.vmem %s30_s30, 4096  ;;  %p728_p12 = scmp.lt.s32.totalorder %s30_s30, %s30_s30 }
  0x1b   :  { %p724_p11 = scmp.ne.s32.totalorder %s30_s30, %s723_s12  ;;  %p729_p13 = scmp.lt.s32.totalorder %s723_s12, %s723_s12 }
  0x1d   :  { %p730_p0 = por %p729_p13, %p728_p12 }
  0x1f   :  { %p731_p1 = pnand %p730_p0, %p724_p11 }
  0x21   :  { %734 = shalt.err (!%p731_p1)
}
  0x22   :  { %35 = dma.hbm_to_vmem [thread:$0]  %s878_s1, 4096, %s30_s30, [#allocation6], %s764_s25, %s764_s25, %s765_s26  }
  0x23   :  { %757 = dma.done.wait [#allocation3], 256  }
  0x24   :  { %758 = vsyncadd [#allocation3], 4294967040 }
  0x25   :  { %759 = dma.done.wait [#allocation6], 4096  }
  0x26   :  { %760 = vsyncadd [#allocation6], 4294963200  ;;  %v767_v0 = vmov 0.0   ;;  %vm768_vm0 = vmmov 0   ;;  %v659_v1 = vld [vmem:[#allocation5 + $0x40] sm:$0xff]   ;;  %v661_v3 = vld [vmem:[#allocation5 + $0x48] sm:$0xff]  }
  0x27   :  { %572 = vmatprep.subr.bf16.mxu0 %v767_v0  ;;  %592 = vmatprep.subr.bf16.mxu1 %v767_v0  ;;  %v660_v2 = vld [vmem:[#allocation5] sm:$0xff]   ;;  %v662_v4 = vld [vmem:[#allocation5 + $0x8] sm:$0xff]   ;;  %v663_v5 = vld [vmem:[#allocation5 + $0x50] sm:$0xff]   ;;  %s769_s17 = smov [#allocation7]  }
  0x28   :  { %588 = vmatprep.mubr.msk.bf16.mxu0 %vm768_vm0, %v767_v0  ;;  %608 = vmatprep.mubr.msk.bf16.mxu1 %vm768_vm0, %v767_v0  ;;  %v664_v6 = vld [vmem:[#allocation5 + $0x10] sm:$0xff]   ;;  %v665_v7 = vld [vmem:[#allocation5 + $0x58] sm:$0xff]   ;;  %v667_v9 = vld [vmem:[#allocation5 + $0x60] sm:$0xff]   ;;  %s493_s18 = sshll.u32 %s769_s17, 4  ;;  %s494_s18 = int_to_ptr.vmem [resolvable:$true] %s493_s18 }
  0x29   :  { %573 = vmatpush3.bf16.msra.mxu0 %v659_v1  ;;  %593 = vmatpush3.bf16.msra.mxu1 %v660_v2  ;;  %v666_v8 = vld [vmem:[#allocation5 + $0x18] sm:$0xff]   ;;  %v668_v10 = vld [vmem:[#allocation5 + $0x20] sm:$0xff]   ;;  %v669_v11 = vld [vmem:[#allocation5 + $0x68] sm:$0xff]   ;;  %s735_s19 = scalar_lea.vmem %s494_s18, 128  ;;  %p740_p3 = scmp.lt.s32.totalorder %s494_s18, %s494_s18 }
  0x2a   :  { %574 = vmatprep.subr.bf16.mxu0 %v767_v0  ;;  %594 = vmatprep.subr.bf16.mxu1 %v767_v0  ;;  %v670_v12 = vld [vmem:[#allocation5 + $0x28] sm:$0xff]   ;;  %v671_v13 = vld [vmem:[#allocation5 + $0x70] sm:$0xff]   ;;  %v673_v15 = vld [vmem:[#allocation5 + $0x78] sm:$0xff]   ;;  %p736_p2 = scmp.ne.s32.totalorder %s494_s18, %s735_s19  ;;  %p741_p4 = scmp.lt.s32.totalorder %s735_s19, %s735_s19 }
  0x2b   :  { %v672_v14 = vld [vmem:[#allocation5 + $0x30] sm:$0xff]   ;;  %v674_v16 = vld [vmem:[#allocation5 + $0x38] sm:$0xff]   ;;  %v675_v19 = vld [vmem:[#allocation5 + $0x80] sm:$0xff]  }
  0x2c   :  { %v65_v17 = vld [vmem:[#allocation2 + $0x4] sm:$0xf]  ;;  %v47_v18 = vld [vmem:[#allocation2] sm:$0xf]  ;;  %v676_v20 = vld [vmem:[#allocation5 + $0xc0] sm:$0xff]   ;;  %p742_p5 = por %p741_p4, %p740_p3 }
  0x2d   :  { %575 = vmatpush3.bf16.msra.mxu0 %v661_v3  ;;  %595 = vmatpush3.bf16.msra.mxu1 %v662_v4  ;;  %v677_v21 = vld [vmem:[#allocation5 + $0x88] sm:$0xff]   ;;  %v679_v23 = vld [vmem:[#allocation5 + $0x90] sm:$0xff]   ;;  %v681_v25 = vld [vmem:[#allocation5 + $0x98] sm:$0xff]  }
  0x2e   :  { %576 = vmatprep.subr.bf16.mxu0 %v767_v0  ;;  %596 = vmatprep.subr.bf16.mxu1 %v767_v0  ;;  %v678_v22 = vld [vmem:[#allocation5 + $0xc8] sm:$0xff]   ;;  %v680_v24 = vld [vmem:[#allocation5 + $0xd0] sm:$0xff]   ;;  %v682_v26 = vld [vmem:[#allocation5 + $0xd8] sm:$0xff]   ;;  %p743_p6 = pnand %p742_p5, %p736_p2 }
  0x2f   :  { %v683_v27 = vld [vmem:[#allocation5 + $0xa0] sm:$0xff]   ;;  %v685_v29 = vld [vmem:[#allocation5 + $0xa8] sm:$0xff]   ;;  %v687_v31 = vld [vmem:[#allocation5 + $0xb0] sm:$0xff]  }
  0x30   :  { %v684_v28 = vld [vmem:[#allocation5 + $0xe0] sm:$0xff]   ;;  %v686_v30 = vld [vmem:[#allocation5 + $0xe8] sm:$0xff]   ;;  %v688_v32 = vld [vmem:[#allocation5 + $0xf0] sm:$0xff]  }
  0x31   :  { %577 = vmatpush3.bf16.msra.mxu0 %v663_v5  ;;  %597 = vmatpush3.bf16.msra.mxu1 %v664_v6  ;;  %v689_v33 = vld [vmem:[#allocation5 + $0xb8] sm:$0xff]   ;;  %v535_v50 = vld [vmem:[%s879_s2] ss:$0 sm:$0xff] }
  0x32   :  { %578 = vmatprep.subr.bf16.mxu0 %v767_v0  ;;  %598 = vmatprep.subr.bf16.mxu1 %v767_v0  ;;  %v690_v34 = vld [vmem:[#allocation5 + $0xf8] sm:$0xff]   ;;  %v484_v58 = vld [vmem:[%s880_s3] sm:$0xff] }
  0x33   :  { %v260_v35 = vld [vmem:[#allocation2 + $0x8] sm:$0xf]  ;;  %v368_v36 = vld [vmem:[#allocation2 + $0xc] sm:$0xf] }
  0x35   :  { %579 = vmatpush3.bf16.msra.mxu0 %v665_v7  ;;  %599 = vmatpush3.bf16.msra.mxu1 %v666_v8 }
  0x36   :  { %580 = vmatprep.subr.bf16.mxu0 %v767_v0  ;;  %600 = vmatprep.subr.bf16.mxu1 %v767_v0 }
  0x39   :  { %581 = vmatpush3.bf16.msra.mxu0 %v667_v9  ;;  %601 = vmatpush3.bf16.msra.mxu1 %v668_v10 }
  0x3a   :  { %582 = vmatprep.subr.bf16.mxu0 %v767_v0  ;;  %602 = vmatprep.subr.bf16.mxu1 %v767_v0 }
  0x3d   :  { %583 = vmatpush3.bf16.msra.mxu0 %v669_v11  ;;  %603 = vmatpush3.bf16.msra.mxu1 %v670_v12 }
  0x3e   :  { %584 = vmatprep.subr.bf16.mxu0 %v767_v0  ;;  %604 = vmatprep.subr.bf16.mxu1 %v767_v0 }
  0x41   :  { %585 = vmatpush3.bf16.msra.mxu0 %v671_v13  ;;  %605 = vmatpush3.bf16.msra.mxu1 %v672_v14 }
  0x42   :  { %586 = vmatprep.subr.bf16.mxu0 %v767_v0  ;;  %606 = vmatprep.subr.bf16.mxu1 %v767_v0 }
  0x45   :  { %587 = vmatpush3.bf16.msra.mxu0 %v673_v15  ;;  %607 = vmatpush3.bf16.msra.mxu1 %v674_v16 }
  0x46   :  { %612 = vmatprep.subr.bf16.mxu0 %v767_v0  ;;  %632 = vmatprep.subr.bf16.mxu1 %v767_v0 }
  0x48   :  { %589 = vmatmul.mubr.bf16.vlgmr.msra.gmra.mrb[0].mxu0 %v65_v17  ;;  %609 = vmatmul.mubr.bf16.vlgmr.msra.gmra.mrb[0].mxu1 %v47_v18 }
  0x49   :  { %613 = vmatpush3.bf16.msra.mxu0 %v675_v19  ;;  %633 = vmatpush3.bf16.msra.mxu1 %v676_v20 }
  0x4a   :  { %614 = vmatprep.subr.bf16.mxu0 %v767_v0  ;;  %634 = vmatprep.subr.bf16.mxu1 %v767_v0 }
  0x4b   :  { %628 = vmatprep.mubr.msk.bf16.mxu0 %vm768_vm0, %v767_v0  ;;  %648 = vmatprep.mubr.msk.bf16.mxu1 %vm768_vm0, %v767_v0 }
  0x4d   :  { %615 = vmatpush3.bf16.msra.mxu0 %v677_v21  ;;  %635 = vmatpush3.bf16.msra.mxu1 %v678_v22 }
  0x4e   :  { %616 = vmatprep.subr.bf16.mxu0 %v767_v0  ;;  %636 = vmatprep.subr.bf16.mxu1 %v767_v0 }
  0x51   :  { %617 = vmatpush3.bf16.msra.mxu0 %v679_v23  ;;  %637 = vmatpush3.bf16.msra.mxu1 %v680_v24 }
  0x52   :  { %618 = vmatprep.subr.bf16.mxu0 %v767_v0  ;;  %638 = vmatprep.subr.bf16.mxu1 %v767_v0 }
  0x55   :  { %619 = vmatpush3.bf16.msra.mxu0 %v681_v25  ;;  %639 = vmatpush3.bf16.msra.mxu1 %v682_v26 }
  0x56   :  { %620 = vmatprep.subr.bf16.mxu0 %v767_v0  ;;  %640 = vmatprep.subr.bf16.mxu1 %v767_v0 }
  0x59   :  { %621 = vmatpush3.bf16.msra.mxu0 %v683_v27  ;;  %641 = vmatpush3.bf16.msra.mxu1 %v684_v28 }
  0x5a   :  { %622 = vmatprep.subr.bf16.mxu0 %v767_v0  ;;  %642 = vmatprep.subr.bf16.mxu1 %v767_v0 }
  0x5d   :  { %623 = vmatpush3.bf16.msra.mxu0 %v685_v29  ;;  %643 = vmatpush3.bf16.msra.mxu1 %v686_v30 }
  0x5e   :  { %624 = vmatprep.subr.bf16.mxu0 %v767_v0  ;;  %644 = vmatprep.subr.bf16.mxu1 %v767_v0 }
  0x61   :  { %625 = vmatpush3.bf16.msra.mxu0 %v687_v31  ;;  %645 = vmatpush3.bf16.msra.mxu1 %v688_v32 }
  0x62   :  { %626 = vmatprep.subr.bf16.mxu0 %v767_v0  ;;  %646 = vmatprep.subr.bf16.mxu1 %v767_v0 }
  0x65   :  { %627 = vmatpush3.bf16.msra.mxu0 %v689_v33  ;;  %647 = vmatpush3.bf16.msra.mxu1 %v690_v34 }
  0x68   :  { %629 = vmatmul.mubr.bf16.vlgmr.msra.gmra.mrb[4].mxu0 %v260_v35  ;;  %649 = vmatmul.mubr.bf16.vlgmr.msra.gmra.mrb[4].mxu1 %v368_v36 }
 0x11b   :  { %v165_v37 = vpop.f32.mrb[0].mxu0  ;;  %v253_v38 = vpop.f32.mrb[0].mxu1 }
 0x11c   :  { %v590_v39 = vpop.f32.mrb[1].mxu0  ;;  %v254_v40 = vadd.f32 %v253_v38, %v165_v37  ;;  %v610_v41 = vpop.f32.mrb[1].mxu1 }
 0x11d   :  { %v168_v42 = vpop.f32.mrb[2].mxu0  ;;  %v256_v43 = vpop.f32.mrb[2].mxu1 }
 0x11e   :  { %v591_v44 = vpop.f32.mrb[3].mxu0  ;;  %v611_v45 = vpop.f32.mrb[3].mxu1 }
 0x13b   :  { %v360_v46 = vpop.f32.mrb[4].mxu0  ;;  %v468_v48 = vpop.f32.mrb[4].mxu1 }
 0x13c   :  { %v366_v47 = vadd.f32 %v360_v46, %v254_v40  ;;  %v630_v49 = vpop.f32.mrb[5].mxu0  ;;  %v650_v51 = vpop.f32.mrb[5].mxu1 }
 0x13d   :  { %v363_v52 = vpop.f32.mrb[6].mxu0  ;;  %v471_v54 = vpop.f32.mrb[6].mxu1 }
 0x13e   :  { %v474_v53 = vadd.f32 %v468_v48, %v366_v47  ;;  %v631_v55 = vpop.f32.mrb[7].mxu0  ;;  %v651_v56 = vpop.f32.mrb[7].mxu1 }
 0x140   :  { %v482_v57 = vadd.f32 %v535_v50, %v474_v53 }
 0x142   :  { %v483_v59 = vmax.f32 %v482_v57, 0.0 }
 0x144   :  { %v485_v60 = vadd.f32 %v484_v58, %v483_v59 }
 0x146   :  { %486 = vst [vmem:[#allocation7] sm:$0xff] %v485_v60 }
 0x147   :  { %746 = shalt.err (!%p743_p6)
}
 0x148   :  { %s747_s21 = scalar_lea.hbm %s881_s4, 128 }
 0x149   :  { %p748_p7 = scmp.ne.s32.totalorder %s881_s4, %s747_s21  ;;  %p751_p8 = scmp.lt.u32.totalorder %s747_s21, %s881_s4 }
 0x14b   :  { %p753_p9 = pnand %p751_p8, %p748_p7 }
 0x14d   :  { %756 = shalt.err (!%p753_p9)
}
 0x14e   :  { %496 = dma.vmem_to_hbm [thread:$0]  %s494_s18, 128, %s881_s4, [#allocation4]  }
 0x14f   :  { %761 = dma.done.wait [#allocation4], 128  }
 0x150   :  { %762 = vsyncadd [#allocation4], 4294967168 }
 0x151   :  { %500 = vsyncpa [#allocation3], 1 }
 0x152   :  { %501 = vsyncpa [#allocation6], 1 }
 0x153   :  { %502 = vsyncpa [#allocation4], 1 }

</bundles_post_ra>
